<compile_context>
chip_gen: v7x
topology: tpu7x:2x2x1
jax: 0.10.0
libtpu: 0.0.40
codegen_flags: <defaults>
</compile_context>

<pallas_src>
import jax
import jax.numpy as jnp
from jax.experimental import pallas as pl
from jax.experimental.pallas import tpu as pltpu


def _pos_embed_kernel(w_pos_ref, out_ref):
    # w_pos_ref: (1, flat_chunk) VMEM tile of the flattened table.
    # out_ref:   (bb, flat_chunk) VMEM tile of the broadcast output.
    out_ref[...] = jnp.broadcast_to(w_pos_ref[...], out_ref.shape)


def _sublane_multiple(dtype) -> int:
    """Sublane-pack multiple: 8 for 4-byte, 16 for bf16, 32 for 1-byte dtypes."""
    itemsize = jnp.dtype(dtype).itemsize
    return max(8, 32 // max(1, itemsize))


def _tpu_vmem_capacity_bytes() -> int:
    try:
        info = pltpu.get_tpu_info()
        return int(getattr(info, "vmem_capacity_bytes", 0) or 0)
    except Exception:
        return 0


def _default_slab_and_budget() -> tuple:
    """(target output-slab bytes, VMEM budget for 2x slab + 2x input chunk)."""
    vmem = _tpu_vmem_capacity_bytes()
    if vmem and vmem <= 64 * 1024 * 1024:
        # v7x: 64 MiB physical / 32 MiB scoped default, 3.2 TB/s HBM.
        return 8 * 1024 * 1024, 24 * 1024 * 1024
    # v5e / v6e (128 MiB physical, 16 / 32 MiB scoped defaults) and fallback.
    return 4 * 1024 * 1024, 12 * 1024 * 1024


def _round_down_to(x: int, m: int) -> int:
    return max(m, (x // m) * m)


def _choose_tiling(batch, flat, itemsize, sub, target_slab_bytes, vmem_budget_bytes):
    """Pick (bb, flat_chunk): batch rows and lane elements per grid step."""
    row_bytes = flat * itemsize

    # 1) Lane chunking: if even the minimal (sub-row) batch block would exceed
    #    the slab target, split the flattened row into 128-aligned chunks.
    #    (Sub-full lane blocks must be multiples of 128.)
    if flat % 128 == 0 and sub * row_bytes > target_slab_bytes:
        chunk = (target_slab_bytes // (sub * itemsize)) // 128 * 128
        flat_chunk = min(flat, max(128, chunk))
    else:
        flat_chunk = flat
    chunk_bytes = flat_chunk * itemsize

    # 2) Batch block so bb*chunk_bytes ~= target, capped by the VMEM budget
    #    (2x output slab double-buffer + 2x input chunk double-buffer).
    max_slab = min(target_slab_bytes, (vmem_budget_bytes - 2 * chunk_bytes) // 2)
    max_slab = max(max_slab, sub * chunk_bytes)        # never below a minimal block
    bb = max(1, max_slab // max(1, chunk_bytes))
    if bb < batch:
        bb = _round_down_to(bb, sub)                   # fully packed sublane tiles
    if bb >= batch:
        bb = batch

    # 3) v7x megacore: ensure >= 2 grid steps when the output is big enough to
    #    care, so ("parallel", ...) shards batch steps across both TensorCores.
    total_bytes = batch * row_bytes
    if (bb >= batch and flat_chunk == flat
            and total_bytes > 4 * 1024 * 1024 and batch >= 2 * sub):
        bb = _round_down_to(pl.cdiv(batch, 2), sub)

    return bb, flat_chunk


def pos_embedding_forward(
    tokens: jax.Array,
    w_pos: jax.Array,
    *,
    target_slab_bytes: int | None = None,
    vmem_budget_bytes: int | None = None,
) -> jax.Array:
    """Broadcast W_pos to (batch, token_length, d_model) via a Pallas kernel.

    tokens: (batch, pos) int array — only its leading dim is used.
    w_pos:  (token_length, d_model) float array.
    """
    batch = tokens.shape[0]
    token_length, d_model = w_pos.shape
    flat = token_length * d_model
    itemsize = jnp.dtype(w_pos.dtype).itemsize
    sub = _sublane_multiple(w_pos.dtype)

    default_target, default_budget = _default_slab_and_budget()
    if target_slab_bytes is None:
        target_slab_bytes = default_target
    if vmem_budget_bytes is None:
        vmem_budget_bytes = default_budget

    bb, flat_chunk = _choose_tiling(
        batch, flat, itemsize, sub, target_slab_bytes, vmem_budget_bytes
    )
    grid = (pl.cdiv(batch, bb), pl.cdiv(flat, flat_chunk))

    # Lane-dense presentation: 2D (batch, token_length*d_model) output.  When
    # flat is not a multiple of 128 (e.g. the toy 5x32 config) the chunk is the
    # full row, so the only masked stores are the row's natural lane tail;
    # padding + slicing in the wrapper would cost a full extra HBM copy of the
    # output, so we deliberately do not pad.
    w_flat = w_pos.reshape(1, flat)

    out_flat = pl.pallas_call(
        _pos_embed_kernel,
        out_shape=jax.ShapeDtypeStruct((batch, flat), w_pos.dtype),
        grid_spec=pltpu.PrefetchScalarGridSpec(
            num_scalar_prefetch=0,
            grid=grid,
            in_specs=[
                # Flattened table chunk; block index constant along the batch
                # axis so it is not re-fetched across batch steps.
                pl.BlockSpec((1, flat_chunk), lambda b, f: (0, f)),
            ],
            out_specs=pl.BlockSpec((bb, flat_chunk), lambda b, f: (b, f)),
        ),
        compiler_params=pltpu.CompilerParams(
            dimension_semantics=("parallel", "parallel"),
        ),
    )(w_flat)

    return out_flat.reshape(batch, token_length, d_model)


if __name__ == "__main__":
    key = jax.random.PRNGKey(0)
    k_w, k_tok, k_w2, k_tok2, k_w3, k_tok3 = jax.random.split(key, 6)

    # ---- Case 1: toy config matching the module -------------------------
    # image_size=16, patch_size=8 -> num_patches = (16//8)**2 = 4
    # use_cls_token=True -> token_length = 5; d_model = 32; not video.
    image_size = 16
    patch_size = 8
    d_model = 32
    use_cls_token = True
    num_patches = (image_size // patch_size) ** 2
    token_length = num_patches + 1 if use_cls_token else num_patches

    # nn.Parameter(torch.empty(...)) is uninitialized in the module; use a
    # deterministic normal init here.
    w_pos = jax.random.normal(k_w, (token_length, d_model), dtype=jnp.float32) * 0.02
    batch = 2
    tokens = jax.random.randint(k_tok, (batch, token_length), 0, 1000, dtype=jnp.int32)

    out = pos_embedding_forward(tokens, w_pos)
    out = jax.block_until_ready(out)
    ref = jnp.broadcast_to(w_pos[None, :, :], (batch, token_length, d_model))
    assert out.shape == (batch, token_length, d_model), out.shape
    assert out.dtype == w_pos.dtype, out.dtype
    assert jnp.array_equal(out, ref), "mismatch vs reference broadcast (case 1)"

    # ---- Case 2: multi-step / ragged batch blocking (f32) ----------------
    token_length2, d_model2, batch2 = 16, 128, 20
    w_pos2 = jax.random.normal(k_w2, (token_length2, d_model2), jnp.float32) * 0.02
    tokens2 = jax.random.randint(
        k_tok2, (batch2, token_length2), 0, 1000, dtype=jnp.int32
    )
    # Small slab target forces bb=8 < batch: grid = (cdiv(20,8)=3, 1) with a
    # ragged (masked) final batch block.
    out2 = pos_embedding_forward(tokens2, w_pos2, target_slab_bytes=64 * 1024)
    out2 = jax.block_until_ready(out2)
    ref2 = jnp.broadcast_to(w_pos2[None], (batch2, token_length2, d_model2))
    assert out2.shape == ref2.shape and jnp.array_equal(out2, ref2), "case 2 mismatch"

    # ---- Case 3: flat-dim split + bf16 sublane packing -------------------
    token_length3, d_model3, batch3 = 16, 256, 20
    w_pos3 = (
        jax.random.normal(k_w3, (token_length3, d_model3), jnp.float32) * 0.02
    ).astype(jnp.bfloat16)
    tokens3 = jax.random.randint(
        k_tok3, (batch3, token_length3), 0, 1000, dtype=jnp.int32
    )
    # Tiny slab target: sub(16)*row(8 KiB) > 32 KiB -> lane dim splits into
    # 128-aligned chunks; grid = (2, 4) with ragged final batch block.
    out3 = pos_embedding_forward(tokens3, w_pos3, target_slab_bytes=32 * 1024)
    out3 = jax.block_until_ready(out3)
    ref3 = jnp.broadcast_to(w_pos3[None], (batch3, token_length3, d_model3))
    assert out3.dtype == jnp.bfloat16
    assert out3.shape == ref3.shape and jnp.array_equal(out3, ref3), "case 3 mismatch"

    print("KERNEL_OK")
</pallas_src>

<mosaic_0001>
module attributes {stable_mosaic.version = 11 : i64} {
  func.func @_pos_embed_kernel(%arg0: i32, %arg1: i32, %arg2: memref<1x160xf32, #tpu.memory_space<vmem>>, %arg3: memref<2x160xf32, #tpu.memory_space<vmem>>) attributes {dimension_semantics = [#tpu.dimension_semantics<parallel>, #tpu.dimension_semantics<parallel>], iteration_bounds = array<i64: 1, 1>, scalar_prefetch = 0 : i64, scratch_operands = 0 : i64, tpu.core_type = #tpu.core_type<tc>, window_params = [{transform_indices = @transform_0, window_bounds = array<i64: 1, 160>}, {transform_indices = @transform_1, window_bounds = array<i64: 2, 160>}]} {
    %c0 = arith.constant 0 : index
    %c0_0 = arith.constant 0 : index
    %0 = vector.load %arg2[%c0, %c0_0] : memref<1x160xf32, #tpu.memory_space<vmem>>, vector<1x160xf32>
    %1 = vector.shape_cast %0 : vector<1x160xf32> to vector<1x160xf32>
    %2 = vector.broadcast %1 : vector<1x160xf32> to vector<2x160xf32>
    %c0_1 = arith.constant 0 : index
    %c0_2 = arith.constant 0 : index
    %3 = vector.load %arg3[%c0_1, %c0_2] : memref<2x160xf32, #tpu.memory_space<vmem>>, vector<2x160xf32>
    tpu.vector_store %arg3[%c0_1, %c0_2], %2 {strides = array<i32>} : memref<2x160xf32, #tpu.memory_space<vmem>>, vector<2x160xf32>,
    return
  }
  func.func @transform_0(%arg0: i32, %arg1: i32) -> (i32, i32) {
    %c0_i32 = arith.constant 0 : i32
    %c0_i32_0 = arith.constant 0 : i32
    return %c0_i32, %arg1 : i32, i32
  }
  func.func @transform_1(%arg0: i32, %arg1: i32) -> (i32, i32) {
    %c0_i32 = arith.constant 0 : i32
    return %arg0, %arg1 : i32, i32
  }
}

</mosaic_0001>

<bundles_post_ra>
// kernel: tpu_custom_call.1
= control target key start
LH: loop header
LB: loop body
LE: loop exit
PB: predicated region body
PF: predicated region fallthrough
CT: control target
= control target key end

     0   :  { %6 = vsyncpa [#allocation3], 0  ;;  %s147_s0 = inlined_call_operand.hbm [shape: f32[1,160], index: 0, kind: input, shape index: {}]   ;;  %s148_s1 = inlined_call_operand.hbm [shape: f32[2,160], index: 1, kind: output, shape index: {}]  }
   0x1   :  { %7 = vsyncpa [#allocation4], 0  ;;  %s110_s6 = smov [#allocation2]   ;;  %s62_s10 = scalar_lea.hbm %s147_s0, 32 }
   0x2   :  { %s14_s7 = sshll.u32 %s110_s6, 4  ;;  %p63_p0 = scmp.ne.s32.totalorder %s147_s0, %s62_s10  ;;  %s15_s7 = int_to_ptr.vmem [resolvable:$true] %s14_s7 }
   0x3   :  { %p66_p1 = scmp.lt.u32.totalorder %s62_s10, %s147_s0 }
   0x5   :  { %p68_p2 = pnand %p66_p1, %p63_p0 }
   0x7   :  { %71 = shalt.err (!%p68_p2)
}
   0x8   :  { %s72_s15 = scalar_lea.vmem %s15_s7, 32  ;;  %p77_p4 = scmp.lt.s32.totalorder %s15_s7, %s15_s7 }
   0x9   :  { %p73_p3 = scmp.ne.s32.totalorder %s15_s7, %s72_s15  ;;  %p78_p5 = scmp.lt.s32.totalorder %s72_s15, %s72_s15 }
   0xb   :  { %p79_p6 = por %p78_p5, %p77_p4 }
   0xd   :  { %p80_p7 = pnand %p79_p6, %p73_p3 }
   0xf   :  { %83 = shalt.err (!%p80_p7)
}
  0x10   :  { %17 = dma.hbm_to_vmem [thread:$0]  %s147_s0, 32, %s15_s7, [#allocation3]  }
  0x11   :  { %106 = dma.done.wait [#allocation3], 32  }
  0x12   :  { %107 = vsyncadd [#allocation3], 4294967264  ;;  %v23_v0 = vlaneseq  ;;  %v111_v1 = vmov 1983009808   ;;  %v21_v7 = vld [vmem:[#allocation2] sm:$0x3] }
  0x13   :  { %v33_v2 = vunpack.c.l.s4 %v111_v1  ;;  %vm40_vm0 = vcmask 1041408   ;;  %vm41_vm1 = vcmask 257026   ;;  %s112_s18 = smov [#allocation5]  }
  0x14   :  { %v24_v3 = vshrl.u32 %v23_v0, 7  ;;  %s50_s19 = sshll.u32 %s112_s18, 4  ;;  %vm42_vm2 = vmor %vm41_vm1, %vm40_vm0  ;;  %s51_s19 = int_to_ptr.vmem [resolvable:$true] %s50_s19 }
  0x15   :  { %v34_v6 = vunpack.c.0.s8 %v33_v2  ;;  %s84_s0 = scalar_lea.vmem %s51_s19, 64  ;;  %p89_p9 = scmp.lt.s32.totalorder %s51_s19, %s51_s19 }
  0x16   :  { %v25_v4 = vsub.s32 0, %v24_v3  ;;  %v29_v5 = vsub.s32 1, %v24_v3  ;;  %p85_p8 = scmp.ne.s32.totalorder %s51_s19, %s84_s0  ;;  %p90_p10 = scmp.lt.s32.totalorder %s84_s0, %s84_s0 }
  0x17   :  { %v37_v10 = vsub.s32 %v34_v6, %v24_v3 }
  0x18   :  { %v26_v8 = vrot.slane %v21_v7, %v25_v4  ;;  %v30_v9 = vrot.slane %v21_v7, %v29_v5  ;;  %p91_p11 = por %p90_p10, %p89_p9 }
  0x1a   :  { %v31_v11 = vcombine.low %v26_v8, %v30_v9  ;;  %p92_p12 = pnand %p91_p11, %p85_p8 }
  0x1c   :  { %v38_v12 = vrot.slane %v31_v11, %v37_v10 }
  0x1e   :  { %43 = vst.msk [vmem:[#allocation5] sm:$0xf] %vm42_vm2, %v38_v12 }
  0x1f   :  { %95 = shalt.err (!%p92_p12)
}
  0x20   :  { %s96_s22 = scalar_lea.hbm %s148_s1, 64 }
  0x21   :  { %p97_p13 = scmp.ne.s32.totalorder %s148_s1, %s96_s22  ;;  %p100_p0 = scmp.lt.u32.totalorder %s96_s22, %s148_s1 }
  0x23   :  { %p102_p1 = pnand %p100_p0, %p97_p13 }
  0x25   :  { %105 = shalt.err (!%p102_p1)
}
  0x26   :  { %53 = dma.vmem_to_hbm [thread:$0]  %s51_s19, 64, %s148_s1, [#allocation4]  }
  0x27   :  { %108 = dma.done.wait [#allocation4], 64  }
  0x28   :  { %109 = vsyncadd [#allocation4], 4294967232 }
  0x29   :  { %57 = vsyncpa [#allocation3], 1 }
  0x2a   :  { %58 = vsyncpa [#allocation4], 1 }

</bundles_post_ra>
